<compile_context>
chip_gen: v5e
topology: v5e:2x2
jax: 0.10.0
libtpu: 0.0.40
codegen_flags: <defaults>
</compile_context>

<pallas_src>
import functools

import jax
import jax.numpy as jnp
import numpy as np
from jax.experimental import pallas as pl
from jax.experimental.pallas import tpu as pltpu

SLOWFAST_ALPHA = 4
MAX_INFLIGHT_DMAS = 8          # cap on simultaneously outstanding frame copies
SMALL_FALLBACK_BYTES = 1 << 20  # below this slow-tensor size, use XLA gather


def _slow_gather_kernel(x_hbm, o_hbm, sems, *, slow_idx, max_inflight):
    """Issue one HBM->HBM DMA per slow frame, windowed to `max_inflight`.

    `slow_idx` is a tuple of compile-time-constant source frame indices, so
    this is a static unroll with static DMA slice starts; the TensorCore only
    builds DMA descriptors.
    """
    t_slow = len(slow_idx)
    copies = []
    for i, src_t in enumerate(slow_idx):
        # Reuse semaphore slot i % max_inflight only after its previous copy
        # has completed (keeps descriptor-queue / sem occupancy bounded).
        if i >= max_inflight:
            copies[i - max_inflight].wait()
        cp = pltpu.make_async_copy(
            x_hbm.at[:, pl.ds(src_t, 1), :],   # src: frame slow_idx[i]
            o_hbm.at[:, pl.ds(i, 1), :],       # dst: output slot i
            sems.at[i % max_inflight],
        )
        cp.start()
        copies.append(cp)
    # Drain the remaining in-flight copies.
    for cp in copies[max(0, t_slow - max_inflight):]:
        cp.wait()


def _slow_indices(t: int, t_slow: int) -> np.ndarray:
    """Replicates torch.linspace(0, t-1, t_slow).long() (float32 + truncate)."""
    if t_slow <= 0:
        return np.zeros((0,), dtype=np.int32)
    if t_slow == 1:
        return np.zeros((1,), dtype=np.int32)
    step = np.float32(t - 1) / np.float32(t_slow - 1)
    vals = np.arange(t_slow, dtype=np.float32) * step
    vals[-1] = np.float32(t - 1)               # torch pins the endpoint exactly
    idx = vals.astype(np.int32)                # .long() truncates toward zero
    return np.clip(idx, 0, t - 1).astype(np.int32)


def pack_pathway(frames: jax.Array, *, small_fallback_bytes: int = SMALL_FALLBACK_BYTES):
    """Returns [slow_pathway, fast_pathway], matching PackPathway.forward."""
    C, T, H, W = frames.shape
    t_slow = T // SLOWFAST_ALPHA
    fast = frames  # identity, same object semantics as PyTorch

    if t_slow == 0:
        # Degenerate clip shorter than alpha: empty slow pathway, no kernel.
        return [jnp.zeros((C, 0, H, W), frames.dtype), fast]

    idx = _slow_indices(T, t_slow)  # host-side, compile-time constants
    itemsize = jnp.dtype(frames.dtype).itemsize
    slow_bytes = C * t_slow * H * W * itemsize

    if slow_bytes < small_fallback_bytes:
        # Launch/descriptor fixed overhead would exceed the copy time
        # (most pronounced on v7x); let XLA's gather handle tiny clips.
        slow = jnp.take(frames, jnp.asarray(idx, dtype=jnp.int32), axis=1)
        return [slow, fast]

    # Lane-dense layout: merge H and W (metadata-only reshape in the wrapper);
    # consumers should keep this layout to avoid an extra HBM pass.
    frames_flat = frames.reshape(C, T, H * W)
    max_inflight = min(t_slow, MAX_INFLIGHT_DMAS)

    slow_flat = pl.pallas_call(
        functools.partial(
            _slow_gather_kernel,
            slow_idx=tuple(int(v) for v in idx),
            max_inflight=max_inflight,
        ),
        out_shape=jax.ShapeDtypeStruct((C, t_slow, H * W), frames.dtype),
        # Both operands stay in HBM; the kernel is pure DMA (no VMEM staging).
        in_specs=[pl.BlockSpec(memory_space=pl.ANY)],
        out_specs=pl.BlockSpec(memory_space=pl.ANY),
        scratch_shapes=[pltpu.SemaphoreType.DMA((max_inflight,))],
        compiler_params=pltpu.CompilerParams(has_side_effects=True),
        # Bandwidth-only op: read + write of the slow tensor.
        cost_estimate=pl.CostEstimate(
            flops=0, transcendentals=0, bytes_accessed=2 * slow_bytes
        ),
    )(frames_flat)

    slow = slow_flat.reshape(C, t_slow, H, W)
    return [slow, fast]


if __name__ == "__main__":
    key = jax.random.PRNGKey(0)
    C, T, H, W = 3, 8, 16, 16  # small shapes; T divisible by slowfast_alpha
    frames = jax.random.normal(key, (C, T, H, W), dtype=jnp.float32)

    t_slow = T // SLOWFAST_ALPHA
    idx = jnp.asarray(_slow_indices(T, t_slow), dtype=jnp.int32)
    slow_ref = jnp.take(frames, idx, axis=1)  # torch.index_select semantics

    # 1) Force the Pallas DMA-gather path (threshold 0) and check it.
    slow, fast = pack_pathway(frames, small_fallback_bytes=0)
    jax.block_until_ready(slow)
    jax.block_until_ready(fast)
    assert slow.shape == (C, t_slow, H, W)
    assert fast.shape == (C, T, H, W)
    assert jnp.allclose(slow, slow_ref)
    assert jnp.allclose(fast, frames)

    # 2) Default dispatch: this clip is tiny, so it takes the XLA-gather
    #    fallback; verify it matches as well.
    slow_fb, fast_fb = pack_pathway(frames)
    jax.block_until_ready(slow_fb)
    assert jnp.allclose(slow_fb, slow_ref)
    assert jnp.allclose(fast_fb, frames)

    print("KERNEL_OK")
</pallas_src>

<mosaic_0001>
module attributes {stable_mosaic.version = 11 : i64} {
  func.func @_slow_gather_kernel(%arg0: memref<3x8x256xf32, #tpu.memory_space<any>>, %arg1: memref<3x2x256xf32, #tpu.memory_space<any>>, %arg2: memref<2x!tpu.dma_semaphore, #tpu.memory_space<semaphore_mem>>) attributes {dimension_semantics = [], scalar_prefetch = 0 : i64, scratch_operands = 1 : i64, tpu.core_type = #tpu.core_type<tc>} {
    %c0_i32 = arith.constant 0 : i32
    %c0_i32_0 = arith.constant 0 : i32
    %c0_i32_1 = arith.constant 0 : i32
    %c0_i32_2 = arith.constant 0 : i32
    %0 = tpu.memref_slice %arg0[%c0_i32_0, %c0_i32_1, %c0_i32_2] : memref<3x8x256xf32, #tpu.memory_space<any>> -> memref<3x1x256xf32, #tpu.memory_space<any>>
    %c0_i32_3 = arith.constant 0 : i32
    %c0_i32_4 = arith.constant 0 : i32
    %c0_i32_5 = arith.constant 0 : i32
    %1 = tpu.memref_slice %arg1[%c0_i32_3, %c0_i32_4, %c0_i32_5] : memref<3x2x256xf32, #tpu.memory_space<any>> -> memref<3x1x256xf32, #tpu.memory_space<any>>
    %2 = tpu.memref_slice %arg2[%c0_i32] : memref<2x!tpu.dma_semaphore, #tpu.memory_space<semaphore_mem>> -> memref<1x!tpu.dma_semaphore, #tpu.memory_space<semaphore_mem>>
    %3 = tpu.memref_squeeze %2 : memref<1x!tpu.dma_semaphore, #tpu.memory_space<semaphore_mem>> -> memref<!tpu.dma_semaphore, #tpu.memory_space<semaphore_mem>>
    tpu.enqueue_dma source(%0 : memref<3x1x256xf32, #tpu.memory_space<any>>) target(%1 : memref<3x1x256xf32, #tpu.memory_space<any>>) target_semaphore(%3 : memref<!tpu.dma_semaphore, #tpu.memory_space<semaphore_mem>>)
    %c1_i32 = arith.constant 1 : i32
    %c0_i32_6 = arith.constant 0 : i32
    %c7_i32 = arith.constant 7 : i32
    %c0_i32_7 = arith.constant 0 : i32
    %4 = tpu.memref_slice %arg0[%c0_i32_6, %c7_i32, %c0_i32_7] : memref<3x8x256xf32, #tpu.memory_space<any>> -> memref<3x1x256xf32, #tpu.memory_space<any>>
    %c0_i32_8 = arith.constant 0 : i32
    %c1_i32_9 = arith.constant 1 : i32
    %c0_i32_10 = arith.constant 0 : i32
    %5 = tpu.memref_slice %arg1[%c0_i32_8, %c1_i32_9, %c0_i32_10] : memref<3x2x256xf32, #tpu.memory_space<any>> -> memref<3x1x256xf32, #tpu.memory_space<any>>
    %6 = tpu.memref_slice %arg2[%c1_i32] : memref<2x!tpu.dma_semaphore, #tpu.memory_space<semaphore_mem>> -> memref<1x!tpu.dma_semaphore, #tpu.memory_space<semaphore_mem>>
    %7 = tpu.memref_squeeze %6 : memref<1x!tpu.dma_semaphore, #tpu.memory_space<semaphore_mem>> -> memref<!tpu.dma_semaphore, #tpu.memory_space<semaphore_mem>>
    tpu.enqueue_dma source(%4 : memref<3x1x256xf32, #tpu.memory_space<any>>) target(%5 : memref<3x1x256xf32, #tpu.memory_space<any>>) target_semaphore(%7 : memref<!tpu.dma_semaphore, #tpu.memory_space<semaphore_mem>>)
    %c0_i32_11 = arith.constant 0 : i32
    %c0_i32_12 = arith.constant 0 : i32
    %c0_i32_13 = arith.constant 0 : i32
    %c0_i32_14 = arith.constant 0 : i32
    %8 = tpu.memref_slice %arg0[%c0_i32_12, %c0_i32_13, %c0_i32_14] : memref<3x8x256xf32, #tpu.memory_space<any>> -> memref<3x1x256xf32, #tpu.memory_space<any>>
    %c0_i32_15 = arith.constant 0 : i32
    %c0_i32_16 = arith.constant 0 : i32
    %c0_i32_17 = arith.constant 0 : i32
    %9 = tpu.memref_slice %arg1[%c0_i32_15, %c0_i32_16, %c0_i32_17] : memref<3x2x256xf32, #tpu.memory_space<any>> -> memref<3x1x256xf32, #tpu.memory_space<any>>
    %10 = tpu.memref_slice %arg2[%c0_i32_11] : memref<2x!tpu.dma_semaphore, #tpu.memory_space<semaphore_mem>> -> memref<1x!tpu.dma_semaphore, #tpu.memory_space<semaphore_mem>>
    %11 = tpu.memref_squeeze %10 : memref<1x!tpu.dma_semaphore, #tpu.memory_space<semaphore_mem>> -> memref<!tpu.dma_semaphore, #tpu.memory_space<semaphore_mem>>
    tpu.wait_dma2 semaphore(%11 : memref<!tpu.dma_semaphore, #tpu.memory_space<semaphore_mem>>) src(%8 : memref<3x1x256xf32, #tpu.memory_space<any>>) dst(%9 : memref<3x1x256xf32, #tpu.memory_space<any>>)
    %c1_i32_18 = arith.constant 1 : i32
    %c0_i32_19 = arith.constant 0 : i32
    %c7_i32_20 = arith.constant 7 : i32
    %c0_i32_21 = arith.constant 0 : i32
    %12 = tpu.memref_slice %arg0[%c0_i32_19, %c7_i32_20, %c0_i32_21] : memref<3x8x256xf32, #tpu.memory_space<any>> -> memref<3x1x256xf32, #tpu.memory_space<any>>
    %c0_i32_22 = arith.constant 0 : i32
    %c1_i32_23 = arith.constant 1 : i32
    %c0_i32_24 = arith.constant 0 : i32
    %13 = tpu.memref_slice %arg1[%c0_i32_22, %c1_i32_23, %c0_i32_24] : memref<3x2x256xf32, #tpu.memory_space<any>> -> memref<3x1x256xf32, #tpu.memory_space<any>>
    %14 = tpu.memref_slice %arg2[%c1_i32_18] : memref<2x!tpu.dma_semaphore, #tpu.memory_space<semaphore_mem>> -> memref<1x!tpu.dma_semaphore, #tpu.memory_space<semaphore_mem>>
    %15 = tpu.memref_squeeze %14 : memref<1x!tpu.dma_semaphore, #tpu.memory_space<semaphore_mem>> -> memref<!tpu.dma_semaphore, #tpu.memory_space<semaphore_mem>>
    tpu.wait_dma2 semaphore(%15 : memref<!tpu.dma_semaphore, #tpu.memory_space<semaphore_mem>>) src(%12 : memref<3x1x256xf32, #tpu.memory_space<any>>) dst(%13 : memref<3x1x256xf32, #tpu.memory_space<any>>)
    return
  }
}

</mosaic_0001>

<bundles_post_ra>
// kernel: tpu_custom_call.1
= control target key start
LH: loop header
LB: loop body
LE: loop exit
PB: predicated region body
PF: predicated region fallthrough
CT: control target
= control target key end

     0   :  { %s78_s12 = smov 128   ;;  %s79_s13 = smov 32   ;;  %s108_s0 = inlined_call_operand.hbm [shape: f32[3,8,256], index: 0, kind: input, shape index: {}]   ;;  %s109_s1 = inlined_call_operand.hbm [shape: f32[3,2,256], index: 1, kind: output, shape index: {}]  }
   0x1   :  { %s10_s8 = sshll.u32 %s108_s0, 4  ;;  %s12_s11 = sshll.u32 %s109_s1, 4  ;;  %s11_s8 = int_to_ptr.hbm [resolvable:$true] %s10_s8  ;;  %s13_s11 = int_to_ptr.hbm [resolvable:$true] %s12_s11 }
   0x2   :  { %17 = sst [smem:[#allocation4]] %s78_s12  ;;  %s80_s14 = smov 1  }
   0x3   :  { %19 = sst [smem:[#allocation4 + $0x1]] %s79_s13  ;;  %s24_s17 = scalar_lea.hbm %s108_s0, 7 }
   0x4   :  { %21 = sst [smem:[#allocation4 + $0x2]] %s80_s14  ;;  %s81_s18 = smov [#allocation2]  }
   0x5   :  { %s82_s19 = smov [#allocation3]   ;;  %s83_s20 = smov 0  }
   0x6   :  { %23 = dma.general %s11_s8, 96, %s13_s11, %s81_s18, %s82_s19, [#allocation4], %s83_s20, 0  }
   0x7   :  { %38 = sst [smem:[#allocation6]] %s78_s12  ;;  %s25_s23 = scalar_lea.hbm %s109_s1, 1 }
   0x8   :  { %40 = sst [smem:[#allocation6 + $0x1]] %s79_s13  ;;  %s31_s24 = sshll.u32 %s24_s17, 4  ;;  %s32_s24 = int_to_ptr.hbm [resolvable:$true] %s31_s24 }
   0x9   :  { %42 = sst [smem:[#allocation6 + $0x2]] %s80_s14  ;;  %s33_s25 = sshll.u32 %s25_s23, 4  ;;  %s34_s25 = int_to_ptr.hbm [resolvable:$true] %s33_s25 }
   0xa   :  { %s84_s26 = smov [#allocation2 + $0x1]   ;;  %s85_s27 = smov [#allocation5]  }
   0xb   :  { %44 = dma.general %s32_s24, 96, %s34_s25, %s84_s26, %s85_s27, [#allocation6], %s83_s20, 0  }
   0xc   :  { %74 = dma.done.wait [#allocation2], 96 }
   0xd   :  { %75 = vsyncadd [#allocation2], 4294967200 }
   0xe   :  { %76 = dma.done.wait [#allocation2 + $0x1], 96 }
   0xf   :  { %77 = vsyncadd [#allocation2 + $0x1], 4294967200 }
  0x10   :  { %51 = vsyncmov [#allocation2] }
  0x13   :  { %s52_s0 = vpop.sfrf %51 }
  0x14   :  { %p64_p0 = scmp.ne.s32.totalorder %s52_s0, 0 }
  0x16   :  { %56 = shalt.err (%p64_p0)  }
  0x17   :  { %58 = vsyncmov [#allocation2 + $0x1] }
  0x1a   :  { %s59_s28 = vpop.sfrf %58 }
  0x1b   :  { %p65_p1 = scmp.ne.s32.totalorder %s59_s28, 0 }
  0x1d   :  { %63 = shalt.err (%p65_p1)  }

</bundles_post_ra>
